<compile_context>
chip_gen: v5e
topology: v5e:2x2
jax: 0.10.0
libtpu: 0.0.40
codegen_flags: <defaults>
</compile_context>

<pallas_src>
import functools

import jax
import jax.numpy as jnp
from jax.experimental import pallas as pl
from jax.experimental.pallas import tpu as pltpu


def _cross_entropy_kernel(logits_ref, labels_ref, out_ref, *,
                          total_n, tile_n, tiles_per_slice):
    # logits_ref: (tile_n, C) in the input dtype (bf16/f32), VMEM
    # labels_ref: (tile_n, 1) int32, VMEM
    # out_ref:    (1, 8, 128) f32, resident across the reduction axis (t)
    s = pl.program_id(0)   # parallel slice (megacore on v7x)
    t = pl.program_id(1)   # reduction step within the slice

    @pl.when(t == 0)
    def _():
        out_ref[...] = jnp.zeros_like(out_ref)

    x = logits_ref[...]                                # native dtype, no upcast
    tn, c = x.shape
    labels = labels_ref[...]                           # (tn, 1) int32

    # Row max in the native dtype (max is exact in bf16).
    row_max = jnp.max(x, axis=-1, keepdims=True)       # (tn, 1) native
    row_max_f32 = row_max.astype(jnp.float32)

    # Numerically stable sum-exp: the f32 shifted tile has a single consumer
    # (the exp), so it can stay fused in vregs.
    shifted = x.astype(jnp.float32) - row_max_f32      # (tn, C) f32
    sum_exp = jnp.sum(jnp.exp(shifted), axis=-1, keepdims=True)  # (tn, 1)

    # One-hot gather of logits[i, labels[i]] from the NATIVE tile (exact: one
    # nonzero per row), with a (1, C) class iota broadcast against the labels.
    cols = jax.lax.broadcasted_iota(jnp.int32, (1, c), 1)
    target = jnp.sum(jnp.where(cols == labels, x, 0),
                     axis=-1, keepdims=True)           # (tn, 1) native

    # lse - target = log(sum_exp) + row_max - target  (all (tn,1) arithmetic).
    per_row = jnp.log(sum_exp) + row_max_f32 - target.astype(jnp.float32)

    # Mask rows past the true batch size (ragged last tile / duplicated tile on
    # the clamped megacore step).  Keep the mask on per_row, before the sum.
    base = (s * tiles_per_slice + t) * tile_n
    rows = base + jax.lax.broadcasted_iota(jnp.int32, (tn, 1), 0)
    per_row = jnp.where(rows < total_n, per_row, 0.0)

    # Accumulate this tile's partial sum (broadcast over the lane-dense output
    # block; the wrapper reads element [s, 0, 0]).
    out_ref[...] += jnp.sum(per_row)


def cross_entropy_loss(logits: jax.Array, labels: jax.Array) -> jax.Array:
    """Mean cross-entropy over integer class labels (== nn.CrossEntropyLoss()).

    logits: (N, C), float (f32 or bf16 — native dtype is kept through the DMA)
    labels: (N,), integer class indices in [0, C)
    returns: scalar float32
    """
    # TODO(synk): PyTorch's ignore_index=-100 default (and weight /
    # label_smoothing options) are not handled; labels must be valid indices.
    n, c = logits.shape
    labels2d = labels.astype(jnp.int32).reshape(n, 1)
    itemsize = jnp.dtype(logits.dtype).itemsize

    # ---- generation-aware VMEM budget --------------------------------------
    try:
        vmem_cap = pltpu.get_tpu_info().vmem_capacity_bytes
    except Exception:  # be conservative if the query is unavailable
        vmem_cap = 64 * 1024 * 1024
    if vmem_cap <= 96 * 1024 * 1024:
        # v7x-class: 64 MiB VMEM per TensorCore.
        vmem_limit = 40 * 1024 * 1024
    else:
        # v5e / v6e: 128 MiB physical VMEM (scoped defaults 16/32 MiB).
        vmem_limit = 64 * 1024 * 1024
    budget = (vmem_limit * 4) // 5          # headroom for compiler temps

    # Per-row VMEM cost (lane dim padded to a multiple of 128):
    #   double-buffered logits block + worst-case two f32 (tile_n, C) temps
    #   (shifted / exp) + double-buffered labels block (padded to 128 lanes).
    c_pad = ((c + 127) // 128) * 128
    per_row_bytes = 2 * c_pad * itemsize + 2 * c_pad * 4 + 2 * 128 * 4

    # Round tile_n to the sublane packing of the input dtype.
    sublane = 8 * max(1, 4 // itemsize)     # 8 for f32, 16 for bf16, 32 for 1B
    tile_n = max(sublane, (budget // per_row_bytes) // sublane * sublane)
    if n <= tile_n:
        tile_n = n                           # single full block for small N
    n_tiles = pl.cdiv(n, tile_n)

    # Always split 2-way across TensorCores when there is more than one tile
    # (v7x megacore; no-op on single-TC v5e/v6e).  For odd n_tiles the clamped
    # index map re-reads the last tile and the row mask zeroes its duplicate.
    n_slices = 2 if n_tiles >= 2 else 1
    tiles_per_slice = pl.cdiv(n_tiles, n_slices)

    def in_idx(s, t):
        return (jnp.minimum(s * tiles_per_slice + t, n_tiles - 1), 0)

    kernel = functools.partial(
        _cross_entropy_kernel,
        total_n=n, tile_n=tile_n, tiles_per_slice=tiles_per_slice)

    cost = pl.CostEstimate(
        flops=5 * n * c,
        transcendentals=n * c,
        bytes_accessed=n * c * itemsize + n * 4 + n_slices * 8 * 128 * 4)

    partial = pl.pallas_call(
        kernel,
        out_shape=jax.ShapeDtypeStruct((n_slices, 8, 128), jnp.float32),
        grid=(n_slices, tiles_per_slice),
        in_specs=[
            pl.BlockSpec((tile_n, c), in_idx),
            pl.BlockSpec((tile_n, 1), in_idx),
        ],
        out_specs=pl.BlockSpec((1, 8, 128), lambda s, t: (s, 0, 0)),
        compiler_params=pltpu.CompilerParams(
            dimension_semantics=("parallel", "arbitrary"),
            vmem_limit_bytes=vmem_limit,
        ),
        cost_estimate=cost,
    )(logits, labels2d)

    return jnp.sum(partial[:, 0, 0]) / jnp.float32(n)


if __name__ == "__main__":
    key = jax.random.PRNGKey(0)
    k_logits, k_labels = jax.random.split(key)

    N, C = 8, 32  # small demo shapes: batch=8, num_classes=32
    logits = jax.random.normal(k_logits, (N, C), dtype=jnp.float32)
    labels = jax.random.randint(k_labels, (N,), 0, C, dtype=jnp.int32)

    loss = cross_entropy_loss(logits, labels)
    loss = jax.block_until_ready(loss)

    # reference check (plain JAX)
    log_probs = jax.nn.log_softmax(logits, axis=-1)
    ref = -jnp.mean(log_probs[jnp.arange(N), labels])
    assert jnp.allclose(loss, ref, atol=1e-5, rtol=1e-5), (loss, ref)

    print("KERNEL_OK")
</pallas_src>

<mosaic_0001>
module attributes {stable_mosaic.version = 11 : i64} {
  func.func @_cross_entropy_kernel(%arg0: i32, %arg1: i32, %arg2: memref<8x32xf32, #tpu.memory_space<vmem>>, %arg3: memref<8x1xi32, #tpu.memory_space<vmem>>, %arg4: memref<1x8x128xf32, #tpu.memory_space<vmem>>) attributes {dimension_semantics = [#tpu.dimension_semantics<parallel>, #tpu.dimension_semantics<arbitrary>], iteration_bounds = array<i64: 1, 1>, scalar_prefetch = 0 : i64, scratch_operands = 0 : i64, tpu.core_type = #tpu.core_type<tc>, window_params = [{transform_indices = @transform_0, window_bounds = array<i64: 8, 32>}, {transform_indices = @transform_1, window_bounds = array<i64: 8, 1>}, {transform_indices = @transform_2, window_bounds = array<i64: 1, 8, 128>}]} {
    %c0_i32 = arith.constant 0 : i32
    %0 = arith.cmpi eq, %arg1, %c0_i32 : i32
    %1 = arith.extui %0 : i1 to i32
    %c0_i32_0 = arith.constant 0 : i32
    %2 = arith.cmpi ne, %1, %c0_i32_0 : i32
    scf.if %2 {
      %cst_16 = arith.constant 0.000000e+00 : f32
      %42 = vector.broadcast %cst_16 : f32 to vector<1x8x128xf32>
      %c0_17 = arith.constant 0 : index
      %c0_18 = arith.constant 0 : index
      %c0_19 = arith.constant 0 : index
      %43 = vector.load %arg4[%c0_17, %c0_18, %c0_19] : memref<1x8x128xf32, #tpu.memory_space<vmem>>, vector<1x8x128xf32>
      tpu.vector_store %arg4[%c0_17, %c0_18, %c0_19], %42 {strides = array<i32>} : memref<1x8x128xf32, #tpu.memory_space<vmem>>, vector<1x8x128xf32>,
    } else {
    }
    %c0 = arith.constant 0 : index
    %c0_1 = arith.constant 0 : index
    %3 = vector.load %arg2[%c0, %c0_1] : memref<8x32xf32, #tpu.memory_space<vmem>>, vector<8x32xf32>
    %c0_2 = arith.constant 0 : index
    %c0_3 = arith.constant 0 : index
    %4 = vector.load %arg3[%c0_2, %c0_3] : memref<8x1xi32, #tpu.memory_space<vmem>>, vector<8x1xi32>
    %cst = arith.constant dense<0xFF800000> : vector<8xf32>
    %5 = vector.multi_reduction <maximumf>, %3, %cst [1] : vector<8x32xf32> to vector<8xf32>
    %6 = vector.shape_cast %5 : vector<8xf32> to vector<8x1xf32>
    %7 = vector.broadcast %6 : vector<8x1xf32> to vector<8x32xf32>
    %8 = arith.subf %3, %7 : vector<8x32xf32>
    %9 = math.exp %8 : vector<8x32xf32>
    %cst_4 = arith.constant dense<0.000000e+00> : vector<8xf32>
    %10 = vector.multi_reduction <add>, %9, %cst_4 [1] : vector<8x32xf32> to vector<8xf32>
    %11 = vector.shape_cast %10 : vector<8xf32> to vector<8x1xf32>
    %12 = tpu.iota {dimensions = array<i32: 1>} : vector<1x32xi32>
    %13 = vector.broadcast %12 : vector<1x32xi32> to vector<8x32xi32>
    %14 = vector.broadcast %4 : vector<8x1xi32> to vector<8x32xi32>
    %15 = arith.cmpi eq, %13, %14 : vector<8x32xi32>
    %c0_i32_5 = arith.constant 0 : i32
    %16 = arith.sitofp %c0_i32_5 : i32 to f32
    %17 = vector.broadcast %16 : f32 to vector<8x32xf32>
    %18 = arith.select %15, %3, %17 : vector<8x32xi1>, vector<8x32xf32>
    %cst_6 = arith.constant dense<0.000000e+00> : vector<8xf32>
    %19 = vector.multi_reduction <add>, %18, %cst_6 [1] : vector<8x32xf32> to vector<8xf32>
    %20 = vector.shape_cast %19 : vector<8xf32> to vector<8x1xf32>
    %21 = math.log %11 : vector<8x1xf32>
    %22 = arith.addf %21, %6 : vector<8x1xf32>
    %23 = arith.subf %22, %20 : vector<8x1xf32>
    %c1_i32 = arith.constant 1 : i32
    %24 = arith.muli %arg0, %c1_i32 : i32
    %25 = arith.addi %24, %arg1 : i32
    %c8_i32 = arith.constant 8 : i32
    %26 = arith.muli %25, %c8_i32 : i32
    %27 = tpu.iota {dimensions = array<i32: 0>} : vector<8x1xi32>
    %28 = vector.broadcast %26 : i32 to vector<8x1xi32>
    %29 = arith.addi %28, %27 : vector<8x1xi32>
    %c8_i32_7 = arith.constant 8 : i32
    %30 = vector.broadcast %c8_i32_7 : i32 to vector<8x1xi32>
    %31 = arith.cmpi slt, %29, %30 : vector<8x1xi32>
    %cst_8 = arith.constant 0.000000e+00 : f32
    %32 = vector.broadcast %cst_8 : f32 to vector<8x1xf32>
    %33 = arith.select %31, %23, %32 : vector<8x1xi1>, vector<8x1xf32>
    %c0_9 = arith.constant 0 : index
    %c0_10 = arith.constant 0 : index
    %c0_11 = arith.constant 0 : index
    %34 = vector.load %arg4[%c0_9, %c0_10, %c0_11] : memref<1x8x128xf32, #tpu.memory_space<vmem>>, vector<1x8x128xf32>
    %35 = vector.shape_cast %33 : vector<8x1xf32> to vector<1x8x1xf32>
    %cst_12 = arith.constant dense<0.000000e+00> : vector<1xf32>
    %36 = vector.multi_reduction <add>, %35, %cst_12 [1, 2] : vector<1x8x1xf32> to vector<1xf32>
    %37 = vector.shape_cast %36 : vector<1xf32> to vector<1x1x1xf32>
    %38 = vector.extract %37[0, 0, 0] : f32 from vector<1x1x1xf32>
    %39 = vector.broadcast %38 : f32 to vector<1x8x128xf32>
    %40 = arith.addf %34, %39 : vector<1x8x128xf32>
    %c0_13 = arith.constant 0 : index
    %c0_14 = arith.constant 0 : index
    %c0_15 = arith.constant 0 : index
    %41 = vector.load %arg4[%c0_13, %c0_14, %c0_15] : memref<1x8x128xf32, #tpu.memory_space<vmem>>, vector<1x8x128xf32>
    tpu.vector_store %arg4[%c0_13, %c0_14, %c0_15], %40 {strides = array<i32>} : memref<1x8x128xf32, #tpu.memory_space<vmem>>, vector<1x8x128xf32>,
    return
  }
  func.func @transform_0(%arg0: i32, %arg1: i32) -> (i32, i32) {
    %c1_i32 = arith.constant 1 : i32
    %0 = arith.muli %arg0, %c1_i32 : i32
    %1 = arith.addi %0, %arg1 : i32
    %c0_i32 = arith.constant 0 : i32
    %2 = arith.minsi %1, %c0_i32 : i32
    %c0_i32_0 = arith.constant 0 : i32
    %c0_i32_1 = arith.constant 0 : i32
    return %2, %c0_i32_0 : i32, i32
  }
  func.func @transform_1(%arg0: i32, %arg1: i32) -> (i32, i32) {
    %c1_i32 = arith.constant 1 : i32
    %0 = arith.muli %arg0, %c1_i32 : i32
    %1 = arith.addi %0, %arg1 : i32
    %c0_i32 = arith.constant 0 : i32
    %2 = arith.minsi %1, %c0_i32 : i32
    %c0_i32_0 = arith.constant 0 : i32
    %c0_i32_1 = arith.constant 0 : i32
    return %2, %c0_i32_0 : i32, i32
  }
  func.func @transform_2(%arg0: i32, %arg1: i32) -> (i32, i32, i32) {
    %c0_i32 = arith.constant 0 : i32
    %c0_i32_0 = arith.constant 0 : i32
    %c0_i32_1 = arith.constant 0 : i32
    return %arg0, %c0_i32, %c0_i32_0 : i32, i32, i32
  }
}

</mosaic_0001>

<bundles_post_ra>
// kernel: tpu_custom_call.1
= control target key start
LH: loop header
LB: loop body
LE: loop exit
PB: predicated region body
PF: predicated region fallthrough
CT: control target
= control target key end

     0   :  { %vm73_vm0 = vcmask 261120   ;;  %s213_s0 = inlined_call_operand.vmem [shape: f32[8,32], index: 0, kind: input, shape index: {}]   ;;  %s214_s1 = inlined_call_operand.vmem [shape: s32[8,1], index: 1, kind: input, shape index: {}]   ;;  %s215_s2 = inlined_call_operand.hbm [shape: f32[1,8,128], index: 2, kind: output, shape index: {}]  }
   0x1   :  { %v71_v0 = vld [vmem:[%s213_s0] sm:$0xff] }
   0x2   :  { %7 = vsyncpa [#allocation3], 0  ;;  %v74_v1 = vsel %vm73_vm0, %v71_v0, -inf  ;;  %v184_v2 = vmov 0   ;;  %v72_v3 = vld [vmem:[%s214_s1] sm:$0xff]  ;;  %v83_v9 = vlaneseq  ;;  %vm106_vm2 = vcmask 7168  }
   0x3   :  { %153 = vset.pattern.permute.xlu0 %v184_v2  ;;  %s185_s0 = smov [#allocation2]   ;;  %s127_s15 = sshll.u32 %s215_s2, 4  ;;  %s128_s15 = int_to_ptr.hbm [resolvable:$true] %s127_s15 }
   0x4   :  { %75 = vmax.xlane.f32.xlu0 %v74_v1  ;;  %v84_v10 = vand.u32 127, %v83_v9  ;;  %s125_s1 = sshll.u32 %s185_s0, 4  ;;  %s126_s1 = int_to_ptr.vmem [resolvable:$true] %s125_s1 }
  0x18   :  { %86 = vperm.xlu0 %153, %v72_v3  }
  0x77   :  { %v76_v4 = vpop.xlane.xlu0 %75 }
  0x78   :  { %v77_v5 = vsub.f32 %v71_v0, %v76_v4 }
  0x7a   :  { %v78_v6 = vmul.f32 1.442695, %v77_v5 }
  0x7c   :  { %154 = vpow2.f32 %v78_v6 }
  0x82   :  { %v155_v7 = vpop.eup %154 }
  0x83   :  { %v80_v8 = vsel %vm73_vm0, %v155_v7, 0.0 }
  0x84   :  { %81 = vadd.xlane.f32.xlu1 %v80_v8 }
  0x8a   :  { %v87_v11 = vpop.permute.xlu0 %86 }
  0x8b   :  { %vm88_vm1 = vcmp.eq.s32.totalorder %v84_v10, %v87_v11 }
  0x8c   :  { %v89_v12 = vsel %vm88_vm1, %v71_v0, 0.0 }
  0x8d   :  { %v90_v13 = vsel %vm73_vm0, %v89_v12, 0.0 }
  0x8e   :  { %91 = vadd.xlane.f32.xlu1 %v90_v13 }
  0xf7   :  { %v82_v14 = vpop.xlane.xlu1 %81 }
  0xf8   :  { %156 = vlog2.f32 %v82_v14 }
  0xfe   :  { %v157_v15 = vpop.eup %156 }
  0xff   :  { %v94_v16 = vmul.f32 0.6931472, %v157_v15 }
 0x101   :  { %v95_v17 = vadd.f32 %v94_v16, %v76_v4  ;;  %v92_v18 = vpop.xlane.xlu1 %91 }
 0x103   :  { %v96_v19 = vsub.f32 %v95_v17, %v92_v18 }
 0x105   :  { %v107_v20 = vsel %vm106_vm2, %v96_v19, 0.0 }
 0x106   :  { %108 = vadd.xlane.f32.xlu2 %v107_v20 }
 0x179   :  { %v109_v21 = vpop.xlane.xlu2 %108 }
 0x17a   :  { %v110_v22 = vrot.slane %v109_v21, 4 }
 0x17c   :  { %v111_v23 = vadd.f32 %v110_v22, %v109_v21 }
 0x17e   :  { %v112_v24 = vrot.slane %v111_v23, 2 }
 0x180   :  { %v113_v25 = vadd.f32 %v112_v24, %v111_v23 }
 0x182   :  { %v114_v26 = vrot.slane %v113_v25, 1 }
 0x184   :  { %v115_v27 = vadd.f32 %v114_v26, %v113_v25 }
 0x186   :  { %148 = vpush %v115_v27 }
 0x1b7   :  { %s149_s16 = spop %148 }
 0x1b8   :  { %v117_v28 = vstv %s149_s16 }
 0x1b9   :  { %119 = vst [vmem:[#allocation2] sm:$0xff] %v117_v28 }
 0x1ba   :  { %130 = dma.vmem_to_hbm [thread:$0]  %s126_s1, 128, %s128_s15, [#allocation3]  }
 0x1bb   :  { %182 = dma.done.wait [#allocation3], 128  }
 0x1bc   :  { %183 = vsyncadd [#allocation3], 4294967168 }
 0x1bd   :  { %135 = vsyncpa [#allocation3], 1 }

</bundles_post_ra>
